<compile_context>
chip_gen: v7x
topology: tpu7x:2x2x1
jax: 0.10.0
libtpu: 0.0.40
codegen_flags: <defaults>
</compile_context>

<pallas_src>
import functools

import numpy as np

import jax
import jax.numpy as jnp
from jax.experimental import pallas as pl
from jax.experimental.pallas import tpu as pltpu


# ---------------------------------------------------------------------------
# Interpolation matrices (host-side, lru_cached constants; match F.interpolate
# bilinear with align_corners=False, the PyTorch default).
# ---------------------------------------------------------------------------
@functools.lru_cache(maxsize=None)
def _bilinear_matrix_np(in_size: int, out_size: int) -> np.ndarray:
    """Dense (out_size, in_size) 1-D interpolation matrix (align_corners=False)."""
    o = np.arange(out_size, dtype=np.float64)
    src = (o + 0.5) * (in_size / out_size) - 0.5
    src = np.maximum(src, 0.0)                     # PyTorch clamps negative src to 0
    i0 = np.clip(np.floor(src).astype(np.int64), 0, in_size - 1)
    i1 = np.minimum(i0 + 1, in_size - 1)
    lam1 = src - i0.astype(np.float64)
    lam0 = 1.0 - lam1
    w = np.zeros((out_size, in_size), np.float64)
    rows = np.arange(out_size)
    np.add.at(w, (rows, i0), lam0)
    np.add.at(w, (rows, i1), lam1)
    return w.astype(np.float32)


@functools.lru_cache(maxsize=None)
def _kron_row_matrix_np(in_size: int, out_size: int, tile_bc: int) -> np.ndarray:
    """Block-diagonal kron(I_tile_bc, Wh): (tile_bc*out_size, tile_bc*in_size)."""
    wh = _bilinear_matrix_np(in_size, out_size)            # (h, H)
    return np.kron(np.eye(tile_bc, dtype=np.float32), wh)


# ---------------------------------------------------------------------------
# Tile selection: legality-first, VMEM-aware, megacore-friendly.
# ---------------------------------------------------------------------------
_MIN_STEP_BYTES = 256 * 1024    # amortize ~0.35us/step pipeline overhead


def _vmem_bytes_per_step(t, H, W, shapes):
    """Rough per-grid-step VMEM footprint (double-buffered inputs, f32 temps)."""
    bf, f32 = 2, 4
    total = 2 * t * H * W * bf                                  # gt block
    for h, w in shapes:
        total += 2 * t * h * w * bf                             # pred block
        total += 2 * W * w * bf                                 # Ww^T constant
        total += 2 * (t * h) * (t * H) * bf                     # kron(I_t, Wh) constant
        total += (t * H * w + t * h * w) * f32                  # matmul intermediates
    return total


def _pick_tile_bc(bc, H, W, shapes, vmem_budget):
    hs = [h for h, _ in shapes]
    divisors = [t for t in range(1, bc + 1) if bc % t == 0]
    # Legal: either a single full-array tile, or sublane-rule satisfied for every slab.
    legal = [t for t in divisors
             if t == bc or ((t * H) % 8 == 0 and all((t * h) % 8 == 0 for h in hs))]
    fitting = [t for t in legal if _vmem_bytes_per_step(t, H, W, shapes) <= vmem_budget]
    if not fitting:
        fitting = [min(legal)]          # smallest footprint; best effort

    def slab_bytes(t):                  # bf16 gt+pred bytes moved per step
        return 2 * t * (H * W + sum(h * w for h, w in shapes))

    big_enough = [t for t in fitting if slab_bytes(t) >= _MIN_STEP_BYTES] or fitting
    # Prefer the smallest tile (kron waste ~tile_bc) whose tile count is even and >= 2
    # (v7x has 2 TensorCores); otherwise the smallest candidate.
    for t in sorted(big_enough):
        n = bc // t
        if n >= 2 and n % 2 == 0:
            return t
    return sorted(big_enough)[0]


# ---------------------------------------------------------------------------
# Fused kernel: all scales in one pass over one BC tile.
# ---------------------------------------------------------------------------
def _make_kernel(n_scales, inv_counts):
    def kernel(*refs):
        gt_ref = refs[0]
        pred_refs = refs[1:1 + n_scales]
        wwt_refs = refs[1 + n_scales:1 + 2 * n_scales]
        kron_refs = refs[1 + 2 * n_scales:1 + 3 * n_scales]
        out_ref = refs[1 + 3 * n_scales]

        g = gt_ref[...]                                   # (tile_bc*H, W) bf16
        acc = jnp.zeros((1, 1), jnp.float32)
        for s in range(n_scales):                         # unrolled (static scales)
            # Column resize (dense, zero waste): (t*H, W) @ (W, w) -> (t*H, w), f32 acc.
            t1 = jnp.dot(g, wwt_refs[s][...], preferred_element_type=jnp.float32)
            # Row resize via small block-diagonal kron(I_t, Wh):
            #   (t*h, t*H) @ (t*H, w) -> (t*h, w); per-bc row groups are preserved.
            resized = jnp.dot(kron_refs[s][...], t1.astype(jnp.bfloat16),
                              preferred_element_type=jnp.float32)
            d = pred_refs[s][...].astype(jnp.float32) - resized   # f32 elementwise
            # Pre-scaled by 1/(B*C*h*w) so the sum over scales/tiles IS the loss.
            acc = acc + jnp.sum(d * d, keepdims=True) * inv_counts[s]
        out_ref[0] = acc
    return kernel


# ---------------------------------------------------------------------------
# Wrapper: layout plumbing (free reshape + bf16 cast) + single pallas_call.
# ---------------------------------------------------------------------------
def multi_scale_loss(preds, gt):
    """JAX/Pallas equivalent of MultiScaleLoss.forward(pred_list, gt). NCHW inputs."""
    B, C, H, W = gt.shape
    BC = B * C
    shapes = [(int(p.shape[2]), int(p.shape[3])) for p in preds]

    try:
        vmem_cap = int(pltpu.get_tpu_info().vmem_capacity_bytes)
    except Exception:
        vmem_cap = 64 * 1024 * 1024          # conservative (v7x physical VMEM)

    tile_bc = _pick_tile_bc(BC, H, W, shapes, vmem_budget=vmem_cap // 2)
    num_tiles = BC // tile_bc

    # Sublane-packed bf16 slabs: reshape is free, so the only extra HBM pass is the
    # half-width bf16 cast (no transpose round-trip).
    gt2 = gt.reshape(BC * H, W).astype(jnp.bfloat16)
    preds2, wwts, krons, inv_counts = [], [], [], []
    for p, (h, w) in zip(preds, shapes):
        preds2.append(p.reshape(BC * h, w).astype(jnp.bfloat16))
        wwts.append(jnp.asarray(_bilinear_matrix_np(W, w).T, dtype=jnp.bfloat16))       # (W, w)
        krons.append(jnp.asarray(_kron_row_matrix_np(H, h, tile_bc),
                                 dtype=jnp.bfloat16))                                   # (t*h, t*H)
        inv_counts.append(1.0 / float(BC * h * w))                                      # mse mean divisor

    n_scales = len(preds)
    kernel = _make_kernel(n_scales, tuple(inv_counts))

    in_specs = [pl.BlockSpec((tile_bc * H, W), lambda i: (i, 0))]       # gt slab
    for h, w in shapes:                                                  # pred slabs
        in_specs.append(pl.BlockSpec((tile_bc * h, w), lambda i: (i, 0)))
    for h, w in shapes:                                                  # column operators
        in_specs.append(pl.BlockSpec((W, w), lambda i: (0, 0)))
    for h, w in shapes:                                                  # row (kron) operators
        in_specs.append(pl.BlockSpec((tile_bc * h, tile_bc * H), lambda i: (0, 0)))

    est = _vmem_bytes_per_step(tile_bc, H, W, shapes)
    vmem_limit = int(min(vmem_cap * 3 // 4, max(2 * est, 32 * 1024 * 1024)))

    partials = pl.pallas_call(
        kernel,
        out_shape=jax.ShapeDtypeStruct((num_tiles, 1, 1), jnp.float32),
        grid_spec=pltpu.PrefetchScalarGridSpec(
            num_scalar_prefetch=0,
            grid=(num_tiles,),
            in_specs=in_specs,
            out_specs=pl.BlockSpec((1, 1, 1), lambda i: (i, 0, 0)),
        ),
        compiler_params=pltpu.CompilerParams(
            dimension_semantics=("parallel",),      # independent per-tile partials
            vmem_limit_bytes=vmem_limit),
    )(gt2, *preds2, *wwts, *krons)

    return jnp.sum(partials)


# ---------------------------------------------------------------------------
# Pure-JAX f32 reference (same interpolation matrices) for a sanity check.
# ---------------------------------------------------------------------------
def _reference_loss(preds, gt):
    total = jnp.zeros((), jnp.float32)
    B, C, H, W = gt.shape
    for p in preds:
        b, c, h, w = p.shape
        wh = jnp.asarray(_bilinear_matrix_np(H, h))    # (h, H)
        ww = jnp.asarray(_bilinear_matrix_np(W, w))    # (w, W)
        gt_r = jnp.einsum('hH,bcHW,wW->bchw', wh, gt.astype(jnp.float32), ww)
        total = total + jnp.mean((p.astype(jnp.float32) - gt_r) ** 2)
    return total


if __name__ == "__main__":
    key = jax.random.PRNGKey(0)
    k_gt, k0, k1, k2 = jax.random.split(key, 4)

    B, C = 2, 4
    gt = jax.random.normal(k_gt, (B, C, 16, 16), dtype=jnp.float32)
    preds = [
        jax.random.normal(k0, (B, C, 16, 16), dtype=jnp.float32),
        jax.random.normal(k1, (B, C, 8, 8), dtype=jnp.float32),
        jax.random.normal(k2, (B, C, 4, 4), dtype=jnp.float32),
    ]

    loss_fn = jax.jit(multi_scale_loss)
    loss = loss_fn(preds, gt)
    jax.block_until_ready(loss)

    ref = _reference_loss(preds, gt)
    jax.block_until_ready(ref)
    # Tolerance covers bf16 storage of the slabs (accumulation is f32).
    np.testing.assert_allclose(np.asarray(loss), np.asarray(ref), rtol=1e-2, atol=1e-2)

    print("KERNEL_OK")
</pallas_src>

<mosaic_0001>
module attributes {stable_mosaic.version = 11 : i64} {
  func.func @kernel(%arg0: i32, %arg1: memref<32x16xbf16, #tpu.memory_space<vmem>>, %arg2: memref<32x16xbf16, #tpu.memory_space<vmem>>, %arg3: memref<16x8xbf16, #tpu.memory_space<vmem>>, %arg4: memref<8x4xbf16, #tpu.memory_space<vmem>>, %arg5: memref<16x16xbf16, #tpu.memory_space<vmem>>, %arg6: memref<16x8xbf16, #tpu.memory_space<vmem>>, %arg7: memref<16x4xbf16, #tpu.memory_space<vmem>>, %arg8: memref<32x32xbf16, #tpu.memory_space<vmem>>, %arg9: memref<16x32xbf16, #tpu.memory_space<vmem>>, %arg10: memref<8x32xbf16, #tpu.memory_space<vmem>>, %arg11: memref<1x1x1xf32, #tpu.memory_space<vmem>>) attributes {dimension_semantics = [#tpu.dimension_semantics<parallel>], iteration_bounds = array<i64: 4>, scalar_prefetch = 0 : i64, scratch_operands = 0 : i64, tpu.core_type = #tpu.core_type<tc>, window_params = [{transform_indices = @transform_0, window_bounds = array<i64: 32, 16>}, {transform_indices = @transform_1, window_bounds = array<i64: 32, 16>}, {transform_indices = @transform_2, window_bounds = array<i64: 16, 8>}, {transform_indices = @transform_3, window_bounds = array<i64: 8, 4>}, {pipeline_mode = #tpu.pipeline_mode<synchronous>, transform_indices = @transform_4, window_bounds = array<i64: 16, 16>}, {pipeline_mode = #tpu.pipeline_mode<synchronous>, transform_indices = @transform_5, window_bounds = array<i64: 16, 8>}, {pipeline_mode = #tpu.pipeline_mode<synchronous>, transform_indices = @transform_6, window_bounds = array<i64: 16, 4>}, {pipeline_mode = #tpu.pipeline_mode<synchronous>, transform_indices = @transform_7, window_bounds = array<i64: 32, 32>}, {pipeline_mode = #tpu.pipeline_mode<synchronous>, transform_indices = @transform_8, window_bounds = array<i64: 16, 32>}, {pipeline_mode = #tpu.pipeline_mode<synchronous>, transform_indices = @transform_9, window_bounds = array<i64: 8, 32>}, {transform_indices = @transform_10, window_bounds = array<i64: 1, 1, 1>}]} {
    %c0 = arith.constant 0 : index
    %c0_0 = arith.constant 0 : index
    %0 = vector.load %arg1[%c0, %c0_0] : memref<32x16xbf16, #tpu.memory_space<vmem>>, vector<32x16xbf16>
    %cst = arith.constant 0.000000e+00 : f32
    %1 = vector.broadcast %cst : f32 to vector<1x1xf32>
    %c0_1 = arith.constant 0 : index
    %c0_2 = arith.constant 0 : index
    %2 = vector.load %arg5[%c0_1, %c0_2] : memref<16x16xbf16, #tpu.memory_space<vmem>>, vector<16x16xbf16>
    %cst_3 = arith.constant dense<0.000000e+00> : vector<32x16xf32>
    %3 = tpu.matmul %0, %2, %cst_3 {dimension_numbers = #tpu.dot_dimension_numbers<[1], [0], [0], [1], [0, 0, 1, 1], [], []>} : vector<32x16xbf16>, vector<16x16xbf16>, vector<32x16xf32> -> vector<32x16xf32>
    %c0_4 = arith.constant 0 : index
    %c0_5 = arith.constant 0 : index
    %4 = vector.load %arg8[%c0_4, %c0_5] : memref<32x32xbf16, #tpu.memory_space<vmem>>, vector<32x32xbf16>
    %5 = arith.truncf %3 : vector<32x16xf32> to vector<32x16xbf16>
    %cst_6 = arith.constant dense<0.000000e+00> : vector<32x16xf32>
    %6 = tpu.matmul %4, %5, %cst_6 {dimension_numbers = #tpu.dot_dimension_numbers<[1], [0], [0], [1], [0, 0, 1, 1], [], []>} : vector<32x32xbf16>, vector<32x16xbf16>, vector<32x16xf32> -> vector<32x16xf32>
    %c0_7 = arith.constant 0 : index
    %c0_8 = arith.constant 0 : index
    %7 = vector.load %arg2[%c0_7, %c0_8] : memref<32x16xbf16, #tpu.memory_space<vmem>>, vector<32x16xbf16>
    %8 = arith.extf %7 : vector<32x16xbf16> to vector<32x16xf32>
    %9 = arith.subf %8, %6 : vector<32x16xf32>
    %10 = arith.mulf %9, %9 : vector<32x16xf32>
    %11 = vector.shape_cast %10 : vector<32x16xf32> to vector<1x32x16xf32>
    %cst_9 = arith.constant dense<0.000000e+00> : vector<1xf32>
    %12 = vector.multi_reduction <add>, %11, %cst_9 [1, 2] : vector<1x32x16xf32> to vector<1xf32>
    %13 = vector.shape_cast %12 : vector<1xf32> to vector<1x1x1xf32>
    %14 = vector.extract %13[0, 0, 0] : f32 from vector<1x1x1xf32>
    %15 = vector.broadcast %14 : f32 to vector<1x1xf32>
    %cst_10 = arith.constant 4.8828125E-4 : f32
    %16 = vector.broadcast %cst_10 : f32 to vector<1x1xf32>
    %17 = arith.mulf %15, %16 : vector<1x1xf32>
    %18 = arith.addf %1, %17 : vector<1x1xf32>
    %c0_11 = arith.constant 0 : index
    %c0_12 = arith.constant 0 : index
    %19 = vector.load %arg6[%c0_11, %c0_12] : memref<16x8xbf16, #tpu.memory_space<vmem>>, vector<16x8xbf16>
    %cst_13 = arith.constant dense<0.000000e+00> : vector<32x8xf32>
    %20 = tpu.matmul %0, %19, %cst_13 {dimension_numbers = #tpu.dot_dimension_numbers<[1], [0], [0], [1], [0, 0, 1, 1], [], []>} : vector<32x16xbf16>, vector<16x8xbf16>, vector<32x8xf32> -> vector<32x8xf32>
    %c0_14 = arith.constant 0 : index
    %c0_15 = arith.constant 0 : index
    %21 = vector.load %arg9[%c0_14, %c0_15] : memref<16x32xbf16, #tpu.memory_space<vmem>>, vector<16x32xbf16>
    %22 = arith.truncf %20 : vector<32x8xf32> to vector<32x8xbf16>
    %cst_16 = arith.constant dense<0.000000e+00> : vector<16x8xf32>
    %23 = tpu.matmul %21, %22, %cst_16 {dimension_numbers = #tpu.dot_dimension_numbers<[1], [0], [0], [1], [0, 0, 1, 1], [], []>} : vector<16x32xbf16>, vector<32x8xbf16>, vector<16x8xf32> -> vector<16x8xf32>
    %c0_17 = arith.constant 0 : index
    %c0_18 = arith.constant 0 : index
    %24 = vector.load %arg3[%c0_17, %c0_18] : memref<16x8xbf16, #tpu.memory_space<vmem>>, vector<16x8xbf16>
    %25 = arith.extf %24 : vector<16x8xbf16> to vector<16x8xf32>
    %26 = arith.subf %25, %23 : vector<16x8xf32>
    %27 = arith.mulf %26, %26 : vector<16x8xf32>
    %28 = vector.shape_cast %27 : vector<16x8xf32> to vector<1x16x8xf32>
    %cst_19 = arith.constant dense<0.000000e+00> : vector<1xf32>
    %29 = vector.multi_reduction <add>, %28, %cst_19 [1, 2] : vector<1x16x8xf32> to vector<1xf32>
    %30 = vector.shape_cast %29 : vector<1xf32> to vector<1x1x1xf32>
    %31 = vector.extract %30[0, 0, 0] : f32 from vector<1x1x1xf32>
    %32 = vector.broadcast %31 : f32 to vector<1x1xf32>
    %cst_20 = arith.constant 0.001953125 : f32
    %33 = vector.broadcast %cst_20 : f32 to vector<1x1xf32>
    %34 = arith.mulf %32, %33 : vector<1x1xf32>
    %35 = arith.addf %18, %34 : vector<1x1xf32>
    %c0_21 = arith.constant 0 : index
    %c0_22 = arith.constant 0 : index
    %36 = vector.load %arg7[%c0_21, %c0_22] : memref<16x4xbf16, #tpu.memory_space<vmem>>, vector<16x4xbf16>
    %cst_23 = arith.constant dense<0.000000e+00> : vector<32x4xf32>
    %37 = tpu.matmul %0, %36, %cst_23 {dimension_numbers = #tpu.dot_dimension_numbers<[1], [0], [0], [1], [0, 0, 1, 1], [], []>} : vector<32x16xbf16>, vector<16x4xbf16>, vector<32x4xf32> -> vector<32x4xf32>
    %c0_24 = arith.constant 0 : index
    %c0_25 = arith.constant 0 : index
    %38 = vector.load %arg10[%c0_24, %c0_25] : memref<8x32xbf16, #tpu.memory_space<vmem>>, vector<8x32xbf16>
    %39 = arith.truncf %37 : vector<32x4xf32> to vector<32x4xbf16>
    %cst_26 = arith.constant dense<0.000000e+00> : vector<8x4xf32>
    %40 = tpu.matmul %38, %39, %cst_26 {dimension_numbers = #tpu.dot_dimension_numbers<[1], [0], [0], [1], [0, 0, 1, 1], [], []>} : vector<8x32xbf16>, vector<32x4xbf16>, vector<8x4xf32> -> vector<8x4xf32>
    %c0_27 = arith.constant 0 : index
    %c0_28 = arith.constant 0 : index
    %41 = vector.load %arg4[%c0_27, %c0_28] : memref<8x4xbf16, #tpu.memory_space<vmem>>, vector<8x4xbf16>
    %42 = arith.extf %41 : vector<8x4xbf16> to vector<8x4xf32>
    %43 = arith.subf %42, %40 : vector<8x4xf32>
    %44 = arith.mulf %43, %43 : vector<8x4xf32>
    %45 = vector.shape_cast %44 : vector<8x4xf32> to vector<1x8x4xf32>
    %cst_29 = arith.constant dense<0.000000e+00> : vector<1xf32>
    %46 = vector.multi_reduction <add>, %45, %cst_29 [1, 2] : vector<1x8x4xf32> to vector<1xf32>
    %47 = vector.shape_cast %46 : vector<1xf32> to vector<1x1x1xf32>
    %48 = vector.extract %47[0, 0, 0] : f32 from vector<1x1x1xf32>
    %49 = vector.broadcast %48 : f32 to vector<1x1xf32>
    %cst_30 = arith.constant 7.812500e-03 : f32
    %50 = vector.broadcast %cst_30 : f32 to vector<1x1xf32>
    %51 = arith.mulf %49, %50 : vector<1x1xf32>
    %52 = arith.addf %35, %51 : vector<1x1xf32>
    %c0_31 = arith.constant 0 : index
    %c0_32 = arith.constant 0 : index
    %c0_33 = arith.constant 0 : index
    %53 = vector.load %arg11[%c0_31, %c0_32, %c0_33] : memref<1x1x1xf32, #tpu.memory_space<vmem>>, vector<1x1x1xf32>
    %54 = vector.shape_cast %53 : vector<1x1x1xf32> to vector<1x1xf32>
    %55 = vector.shape_cast %52 : vector<1x1xf32> to vector<1x1x1xf32>
    tpu.vector_store %arg11[%c0_31, %c0_32, %c0_33], %55 {strides = array<i32>} : memref<1x1x1xf32, #tpu.memory_space<vmem>>, vector<1x1x1xf32>,
    return
  }
  func.func @transform_0(%arg0: i32) -> (i32, i32) {
    %c0_i32 = arith.constant 0 : i32
    %c0_i32_0 = arith.constant 0 : i32
    return %arg0, %c0_i32 : i32, i32
  }
  func.func @transform_1(%arg0: i32) -> (i32, i32) {
    %c0_i32 = arith.constant 0 : i32
    %c0_i32_0 = arith.constant 0 : i32
    return %arg0, %c0_i32 : i32, i32
  }
  func.func @transform_2(%arg0: i32) -> (i32, i32) {
    %c0_i32 = arith.constant 0 : i32
    %c0_i32_0 = arith.constant 0 : i32
    return %arg0, %c0_i32 : i32, i32
  }
  func.func @transform_3(%arg0: i32) -> (i32, i32) {
    %c0_i32 = arith.constant 0 : i32
    %c0_i32_0 = arith.constant 0 : i32
    return %arg0, %c0_i32 : i32, i32
  }
  func.func @transform_4(%arg0: i32) -> (i32, i32) {
    %c0_i32 = arith.constant 0 : i32
    %c0_i32_0 = arith.constant 0 : i32
    %c0_i32_1 = arith.constant 0 : i32
    return %c0_i32, %c0_i32_0 : i32, i32
  }
  func.func @transform_5(%arg0: i32) -> (i32, i32) {
    %c0_i32 = arith.constant 0 : i32
    %c0_i32_0 = arith.constant 0 : i32
    %c0_i32_1 = arith.constant 0 : i32
    return %c0_i32, %c0_i32_0 : i32, i32
  }
  func.func @transform_6(%arg0: i32) -> (i32, i32) {
    %c0_i32 = arith.constant 0 : i32
    %c0_i32_0 = arith.constant 0 : i32
    %c0_i32_1 = arith.constant 0 : i32
    return %c0_i32, %c0_i32_0 : i32, i32
  }
  func.func @transform_7(%arg0: i32) -> (i32, i32) {
    %c0_i32 = arith.constant 0 : i32
    %c0_i32_0 = arith.constant 0 : i32
    %c0_i32_1 = arith.constant 0 : i32
    return %c0_i32, %c0_i32_0 : i32, i32
  }
  func.func @transform_8(%arg0: i32) -> (i32, i32) {
    %c0_i32 = arith.constant 0 : i32
    %c0_i32_0 = arith.constant 0 : i32
    %c0_i32_1 = arith.constant 0 : i32
    return %c0_i32, %c0_i32_0 : i32, i32
  }
  func.func @transform_9(%arg0: i32) -> (i32, i32) {
    %c0_i32 = arith.constant 0 : i32
    %c0_i32_0 = arith.constant 0 : i32
    %c0_i32_1 = arith.constant 0 : i32
    return %c0_i32, %c0_i32_0 : i32, i32
  }
  func.func @transform_10(%arg0: i32) -> (i32, i32, i32) {
    %c0_i32 = arith.constant 0 : i32
    %c0_i32_0 = arith.constant 0 : i32
    %c0_i32_1 = arith.constant 0 : i32
    return %arg0, %c0_i32, %c0_i32_0 : i32, i32, i32
  }
}

</mosaic_0001>

<bundles_post_ra>
// kernel: multi_scale_loss.1
= control target key start
LH: loop header
LB: loop body
LE: loop exit
PB: predicated region body
PF: predicated region fallthrough
CT: control target
= control target key end

     0   :  { %s1140_s13 = smov 0   ;;  %s1218_s0 = inlined_call_operand.vmem [shape: bf16[128,16], index: 0, kind: input, shape index: {}]   ;;  %s1219_s1 = inlined_call_operand.vmem [shape: bf16[128,16], index: 1, kind: input, shape index: {}]   ;;  %s1220_s2 = inlined_call_operand.vmem [shape: bf16[64,8], index: 2, kind: input, shape index: {}]   ;;  %s1221_s3 = inlined_call_operand.vmem [shape: bf16[32,4], index: 3, kind: input, shape index: {}]   ;;  %s1222_s4 = inlined_call_operand.vmem [shape: bf16[16,16], index: 4, kind: input, shape index: {}]   ;;  %s1223_s5 = inlined_call_operand.vmem [shape: bf16[16,8], index: 5, kind: input, shape index: {}]   ;;  %s1224_s6 = inlined_call_operand.vmem [shape: bf16[16,4], index: 6, kind: input, shape index: {}]   ;;  %s1225_s7 = inlined_call_operand.vmem [shape: bf16[32,32], index: 7, kind: input, shape index: {}]   ;;  %s1226_s8 = inlined_call_operand.vmem [shape: bf16[16,32], index: 8, kind: input, shape index: {}]   ;;  %s1227_s9 = inlined_call_operand.vmem [shape: bf16[8,32], index: 9, kind: input, shape index: {}]   ;;  %s1228_s10 = inlined_call_operand.vmem [shape: f32[4,1,1], index: 10, kind: output, shape index: {}]  }
   0x1 LB: > { %s1146_s14 = sadd.s32 4294967295, %s1081_s13   ;;  %p949_p0 = scmp.ge.s32.totalorder %s1081_s13, 1  ;;  %s1081_s13 = sphi %s1140_s13, %s20_s13  }
   0x2   : > { %p344_p1 = scmp.lt.s32.totalorder %s1081_s13, 5 }
   0x4   : > { %p345_p2 = pnand %p949_p0, %p344_p1 }
   0x5   : > { %v1067_v0 = vld [vmem:[%s1222_s4] sm:$0xff] (!%p345_p2)   ;;  %s950_s17 = sshll.u32 (!%p345_p2), %s1146_s14, 2  ;;  %vm442_vm0 = vcmask (!%p345_p2), 130048   ;;  %vm514_vm1 = vcmask (!%p345_p2), 261120   ;;  %v1073_v15 = vld [vmem:[%s1225_s7 + $0x8] sm:$0xff] (!%p345_p2)   ;;  %v1083_v19 = vmov (!%p345_p2), 0.0  }
   0x6   : > { %348 = sbr.rel (%p345_p2) target bundleno = 686 (0x2ae), region = 60  ;;  %p395_p3 = scmp.lt.s32.totalorder (!%p345_p2), %s950_s17, 15  ;;  %1009 = vmatprep.subr.bf16.mxu0 (!%p345_p2), %v1067_v0  ;;  %v1070_v1 = vld [vmem:[%s1223_s5] sm:$0xff] (!%p345_p2)   ;;  %vm1084_vm2 = vmmov (!%p345_p2), 0   ;;  %vm723_vm3 = vcmask (!%p345_p2), 64512   ;;  %vm846_vm4 = vcmask (!%p345_p2), 31744  }
   0x7   : > { %1010 = vmatpush3.bf16.msra.mxu0 (!%p345_p2), %v1067_v0  ;;  %v1071_v2 = vld [vmem:[%s1224_s6] sm:$0xff] (!%p345_p2)   ;;  %s954_s16 = sshll.u32 (!%p345_p2), %s1146_s14, 1  ;;  %p412_p5 = scmp.lt.s32.totalorder (!%p345_p2), %s1146_s14, 3  ;;  %vm860_vm5 = vcmask (!%p345_p2), 0  }
   0x8   : > { %1023 = vmatprep.subr.bf16.mxu0 (!%p345_p2), %v1070_v1  ;;  %v1072_v5 = vld [vmem:[%s1225_s7] sm:$0xff] (!%p345_p2)   ;;  %p407_p4 = scmp.lt.s32.totalorder (!%p345_p2), %s954_s16, 7 }
   0x9   : > { %1019 = vmatprep.mubr.msk.bf16.mxu1 (!%p345_p2), %vm514_vm1, %v1072_v5  ;;  %v1074_v23 = vld [vmem:[%s1226_s8] sm:$0xff] (!%p345_p2)  }
   0xa   : > { %v796_v27 = vld [vmem:[%s1227_s9] sm:$0xf] (!%p345_p2) }
   0xd   : > { %s1230_s17 = smov (!%p395_p3, %s950_s17), 15  ;;  %s1232_s16 = smov (!%p407_p4, %s954_s16), 7 }
   0xe   : > { %s951_s20 = sshll.u32 %s1230_s17, 2  ;;  %s955_s22 = sshll.u32 %s1232_s16, 2 }
   0xf   : > { %s398_s23 = scalar_lea.vmem %s1218_s0, %s951_s20  ;;  %s404_s21 = scalar_lea.vmem %s1219_s1, %s951_s20 }
  0x10   : > { %v1068_v3 = vld [vmem:[%s398_s23] sm:$0xff]   ;;  %v1069_v4 = vld [vmem:[%s398_s23 + $0x8] sm:$0xff]   ;;  %s410_s25 = scalar_lea.vmem %s1220_s2, %s955_s22  ;;  %s1234_s14 = smov (!%p412_p5, %s1146_s14), 3 }
  0x11   : > { %1011 = vmatprep.mubr.msk.bf16.mxu0 %vm442_vm0, %v1068_v3  ;;  %v989_v28 = vld [vmem:[%s404_s21 + $0x8] sm:$0xff]   ;;  %v978_v29 = vld [vmem:[%s404_s21] sm:$0xff]   ;;  %s956_s17 = sshll.u32 %s1234_s14, 2  ;;  %s418_s15 = scalar_lea.vmem %s1228_s10, %s1234_s14 }
  0x12   : > { %1012 = vmatmul.mubr.msk.bf16.vlgmr.msra.gmra.mrb[0].mxu0 %vm442_vm0, %v1069_v4  ;;  %v983_v30 = vunpack.c.l.bf16 %v989_v28  ;;  %v979_v31 = vunpack.c.l.bf16 %v978_v29  ;;  %v984_v33 = vunpack.c.h.bf16 %v989_v28  ;;  %v980_v34 = vunpack.c.h.bf16 %v978_v29  ;;  %v986_v39 = vld [vmem:[%s410_s25] sm:$0xff]   ;;  %s415_s27 = scalar_lea.vmem %s1221_s3, %s956_s17 }
  0x13   : > { %1024 = vmatpush3.bf16.msra.mxu0 %v1070_v1  ;;  %1025 = vmatprep.mubr.msk.bf16.mxu0 %vm442_vm0, %v1068_v3  ;;  %v987_v44 = vunpack.c.l.bf16 %v986_v39  ;;  %v988_v47 = vunpack.c.h.bf16 %v986_v39  ;;  %v842_v57 = vld [vmem:[%s415_s27] sm:$0xf] }
  0x14   : > { %1037 = vmatprep.subr.bf16.mxu0 %v1071_v2  ;;  %v843_v1 = vunpack.c.l.bf16 %v842_v57 }
  0x1a   : > { %1026 = vmatmul.mubr.msk.bf16.vlgmr.msra.gmra.mrb[4].mxu0 %vm442_vm0, %v1069_v4 }
  0x1b   : > { %1038 = vmatpush3.bf16.msra.mxu0 %v1071_v2  ;;  %1039 = vmatprep.mubr.msk.bf16.mxu0 %vm442_vm0, %v1068_v3 }
  0x22   : > { %1040 = vmatmul.mubr.msk.bf16.vlgmr.msra.gmra.mrb[8].mxu0 %vm442_vm0, %v1069_v4 }
  0xe5   : > { %v1013_v6 = vpop.f32.mrb[0].mxu0 }
  0xe6   : > { %v483_v7 = vpop.f32.mrb[1].mxu0 }
  0xe7   : > { %v1014_v8 = vpop.f32.mrb[2].mxu0 }
  0xe8   : > { %v503_v9 = vpack.c.bf16 %v1014_v8, %v1013_v6  ;;  %v486_v10 = vpop.f32.mrb[3].mxu0 }
  0xe9   : > { %v502_v11 = vpack.c.bf16 %v486_v10, %v483_v7 }
  0xeb   : > { %1015 = vmatprep.subr.bf16.mxu1 %v502_v11 }
  0xec   : > { %1016 = vmatpush3.bf16.msra.mxu1 %v502_v11 }
  0xed   : > { %1017 = vmatprep.subr.bf16.mxu1 %v503_v9  ;;  %v1027_v12 = vpop.f32.mrb[4].mxu0 }
  0xee   : > { %v647_v13 = vpop.f32.mrb[5].mxu0 }
  0xef   : > { %v1028_v14 = vpop.f32.mrb[6].mxu0 }
  0xf0   : > { %v665_v16 = vpack.c.bf16 %v1028_v14, %v1027_v12  ;;  %1018 = vmatpush3.bf16.msra.mxu1 %v503_v9  ;;  %v650_v17 = vpop.f32.mrb[7].mxu0 }
  0xf1   : > { %v664_v18 = vpack.c.bf16 %v650_v17, %v647_v13  ;;  %1029 = vmatprep.subr.bf16.mxu1 %v1083_v19 }
  0xf3   : > { %1020 = vmatmul.mubr.msk.bf16.vlgmr.msra.gmra.mrb[0].mxu1 %vm514_vm1, %v1073_v15 }
  0xf4   : > { %1030 = vmatpush3.bf16.msra.mxu1 %v664_v18  ;;  %1033 = vmatprep.mubr.msk.bf16.mxu1 %vm1084_vm2, %v1083_v19 }
  0xf5   : > { %v1041_v20 = vpop.f32.mrb[8].mxu0  ;;  %1031 = vmatprep.subr.bf16.mxu1 %v1083_v19 }
  0xf6   : > { %v781_v21 = vpop.f32.mrb[9].mxu0 }
  0xf7   : > { %v1042_v22 = vpop.f32.mrb[10].mxu0 }
  0xf8   : > { %v798_v24 = vpack.c.bf16 %v1042_v22, %v1041_v20  ;;  %1032 = vmatpush3.bf16.msra.mxu1 %v665_v16  ;;  %v784_v25 = vpop.f32.mrb[11].mxu0 }
  0xf9   : > { %v797_v26 = vpack.c.bf16 %v784_v25, %v781_v21  ;;  %1043 = vmatprep.subr.bf16.mxu1 %v1083_v19 }
  0xfb   : > { %1034 = vmatmul.mubr.msk.bf16.vlgmr.msra.gmra.mrb[4].mxu1 %vm514_vm1, %v1074_v23 }
  0xfc   : > { %1044 = vmatpush3.bf16.msra.mxu1 %v797_v26  ;;  %1047 = vmatprep.mubr.msk.bf16.mxu1 %vm1084_vm2, %v1083_v19 }
  0xfd   : > { %1045 = vmatprep.subr.bf16.mxu1 %v1083_v19 }
 0x100   : > { %1046 = vmatpush3.bf16.msra.mxu1 %v798_v24 }
 0x103   : > { %1048 = vmatmul.mubr.msk.bf16.vlgmr.msra.gmra.mrb[8].mxu1 %vm514_vm1, %v796_v27 }
 0x1c6   : > { %v1021_v32 = vpop.f32.mrb[0].mxu1 }
 0x1c7   : > { %v555_v35 = vpop.f32.mrb[1].mxu1  ;;  %v580_v36 = vsub.f32 %v983_v30, %v1021_v32 }
 0x1c8   : > { %v578_v37 = vsub.f32 %v979_v31, %v555_v35  ;;  %v1022_v38 = vpop.f32.mrb[2].mxu1 }
 0x1c9   : > { %v558_v40 = vpop.f32.mrb[3].mxu1  ;;  %v581_v42 = vsub.f32 %v984_v33, %v1022_v38  ;;  %v584_v45 = vmul.f32 %v580_v36, %v580_v36 }
 0x1ca   : > { %v582_v41 = vmul.f32 %v578_v37, %v578_v37  ;;  %v579_v43 = vsub.f32 %v980_v34, %v558_v40 }
 0x1cb   : > { %v585_v49 = vmul.f32 %v581_v42, %v581_v42  ;;  %v589_v56 = vsel %vm442_vm0, %v584_v45, 0.0 }
 0x1cc   : > { %v583_v46 = vmul.f32 %v579_v43, %v579_v43  ;;  %v586_v48 = vsel %vm442_vm0, %v582_v41, 0.0 }
 0x1cd   : > { %v591_v62 = vsel %vm442_vm0, %v585_v49, 0.0 }
 0x1ce   : > { %v587_v50 = vsel %vm442_vm0, %v583_v46, 0.0  ;;  %v708_v51 = vpop.f32.mrb[4].mxu1 }
 0x1cf   : > { %v719_v52 = vsub.f32 %v987_v44, %v708_v51  ;;  %v1035_v53 = vpop.f32.mrb[5].mxu1  ;;  %v588_v54 = vadd.f32 %v587_v50, %v586_v48 }
 0x1d0   : > { %v711_v55 = vpop.f32.mrb[6].mxu1 }
 0x1d1   : > { %v721_v58 = vmul.f32 %v719_v52, %v719_v52  ;;  %v720_v59 = vsub.f32 %v988_v47, %v711_v55  ;;  %v1036_v60 = vpop.f32.mrb[7].mxu1  ;;  %v590_v61 = vadd.f32 %v589_v56, %v588_v54 }
 0x1d3   : > { %v722_v63 = vmul.f32 %v720_v59, %v720_v59  ;;  %v592_v0 = vadd.f32 %v591_v62, %v590_v61  ;;  %v724_v2 = vsel %vm723_vm3, %v721_v58, 0.0 }
 0x1d5   : > { %593 = vadd.xlane.f32.xlu0 %v592_v0  ;;  %v725_v3 = vsel %vm723_vm3, %v722_v63, 0.0 }
 0x1d6   : > { %v836_v4 = vpop.f32.mrb[8].mxu1  ;;  %v726_v5 = vadd.f32 %v725_v3, %v724_v2 }
 0x1d7   : > { %v844_v6 = vsub.f32 %v843_v1, %v836_v4  ;;  %v1049_v7 = vpop.f32.mrb[9].mxu1 }
 0x1d8   : > { %v839_v8 = vpop.f32.mrb[10].mxu1 }
 0x1d9   : > { %v845_v9 = vmul.f32 %v844_v6, %v844_v6  ;;  %v1050_v10 = vpop.f32.mrb[11].mxu1  ;;  %727 = vadd.xlane.f32.xlu0 %v726_v5 }
 0x1db   : > { %v847_v11 = vsel %vm846_vm4, %v845_v9, 0.0 }
 0x1dc   : > { %848 = vadd.xlane.f32.xlu1 %v847_v11 }
 0x262   : > { %v594_v12 = vpop.xlane.xlu0 %593 }
 0x263   : > { %v595_v13 = vrot.slane %v594_v12, 4 }
 0x265   : > { %v596_v14 = vadd.f32 %v595_v13, %v594_v12 }
 0x266   : > { %v728_v15 = vpop.xlane.xlu0 %727 }
 0x267   : > { %v597_v16 = vrot.slane %v596_v14, 2  ;;  %v729_v17 = vrot.slane %v728_v15, 4 }
 0x269   : > { %v730_v18 = vadd.f32 %v729_v17, %v728_v15  ;;  %v849_v19 = vpop.xlane.xlu1 %848  ;;  %v598_v20 = vadd.f32 %v597_v16, %v596_v14 }
 0x26a   : > { %v850_v21 = vrot.slane %v849_v19, 4 }
 0x26b   : > { %v731_v22 = vrot.slane %v730_v18, 2  ;;  %v599_v23 = vrot.slane %v598_v20, 1 }
 0x26c   : > { %v851_v24 = vadd.f32 %v850_v21, %v849_v19 }
 0x26d   : > { %v732_v25 = vadd.f32 %v731_v22, %v730_v18  ;;  %v600_v26 = vadd.f32 %v599_v23, %v598_v20 }
 0x26e   : > { %v852_v27 = vrot.slane %v851_v24, 2 }
 0x26f   : > { %1051 = vpush %v600_v26  ;;  %v733_v28 = vrot.slane %v732_v25, 1 }
 0x270   : > { %v853_v29 = vadd.f32 %v852_v27, %v851_v24 }
 0x271   : > { %v734_v30 = vadd.f32 %v733_v28, %v732_v25 }
 0x272   : > { %v854_v31 = vrot.slane %v853_v29, 1 }
 0x273   : > { %1053 = vpush %v734_v30 }
 0x274   : > { %v855_v32 = vadd.f32 %v854_v31, %v853_v29 }
 0x276   : > { %1055 = vpush %v855_v32 }
 0x2a0   : > { %s1052_s28 = spop %1051 }
 0x2a1   : > { %v602_v33 = vstv %s1052_s28 }
 0x2a2   : > { %v603_v35 = vmul.f32 0.00048828125, %v602_v33 }
 0x2a4   : > { %s1054_s29 = spop %1053 }
 0x2a5   : > { %v736_v34 = vstv %s1054_s29 }
 0x2a6   : > { %v737_v36 = vmul.f32 0.001953125, %v736_v34 }
 0x2a7   : > { %s1056_s30 = spop %1055 }
 0x2a8   : > { %v738_v37 = vadd.f32 %v737_v36, %v603_v35  ;;  %v857_v38 = vstv %s1056_s30 }
 0x2a9   : > { %v858_v39 = vmul.f32 0.0078125, %v857_v38 }
 0x2ab   : > { %v859_v40 = vadd.f32 %v858_v39, %v738_v37 }
 0x2ad   : > { %861 = vst.msk [vmem:[%s418_s15] sm:$0x1] %vm860_vm5, %v859_v40 }
 0x2ae PF: > { %s20_s13 = sadd.s32 1, %s1081_s13  }
 0x2af   : > { %p17_p6 = scmp.ge.s32.totalorder %s20_s13, 6  }
 0x2b1   :  { %19 = sbr.rel (!%p17_p6) target bundleno = 1 (0x1), region = 99 }

</bundles_post_ra>
